<compile_context>
chip_gen: v6e
topology: v6e:2x2x1
jax: 0.10.0
libtpu: 0.0.40
codegen_flags: <defaults>
</compile_context>

<pallas_src>
import functools
import math

import jax
import jax.numpy as jnp
from jax import lax
from jax.experimental import pallas as pl
from jax.experimental.pallas import tpu as pltpu


def _round_up(n, m):
    return ((n + m - 1) // m) * m


def _gelu(v, approximate=False):
    if approximate:
        c = math.sqrt(2.0 / math.pi)
        return 0.5 * v * (1.0 + jnp.tanh(c * (v + 0.044715 * v * v * v)))
    # nn.GELU() default is the exact (erf-based) GELU.
    return 0.5 * v * (1.0 + lax.erf(v * (1.0 / math.sqrt(2.0))))


def icb_kernel(stack_k, approx_gelu,
               x_ref, halo_ref, w1_ref, b1_ref, w2_ref, b2_ref, w3_ref, b3_ref,
               o_ref, shift_ref):
    # x_ref: (1, TILE_L, C_pad) activation tile (compute dtype, e.g. bf16).
    # halo_ref: (1, 2, C_pad) -- row 0: global row before the tile, row 1: after.
    x = x_ref[0]                                    # (TILE_L, C_pad)
    tl, cpad = x.shape

    # --- conv1: pointwise (k=1) -> single MXU matmul, f32 accumulate ---
    x1 = jnp.dot(x, w1_ref[...], preferred_element_type=jnp.float32) + b1_ref[...]

    # --- k=3 shifted taps, built with slice stores + single-row halo stores ---
    if stack_k:
        # shift_ref: (TILE_L, 3*C_pad) = [prev | center | next], K-stacked.
        shift_ref[:, cpad:2 * cpad] = x
        shift_ref[0:1, 0:cpad] = halo_ref[0, 0:1, :]            # prev halo row
        shift_ref[1:tl, 0:cpad] = x[0:tl - 1, :]                # prev tap rows 1..T-1
        shift_ref[0:tl - 1, 2 * cpad:3 * cpad] = x[1:tl, :]     # next tap rows 0..T-2
        shift_ref[tl - 1:tl, 2 * cpad:3 * cpad] = halo_ref[0, 1:2, :]  # next halo row
        # ONE matmul with K = 3*C_pad (good for v6e/v7x 256-deep MXU).
        x2 = (jnp.dot(shift_ref[...], w2_ref[...],
                      preferred_element_type=jnp.float32) + b2_ref[...])
    else:
        # v5e-friendly path: 3 accumulating C_pad-deep matmuls, no K-stacking.
        # shift_ref: (2, TILE_L, C_pad) -- slot 0: prev tap, slot 1: next tap.
        shift_ref[0, 0:1, :] = halo_ref[0, 0:1, :]
        shift_ref[0, 1:tl, :] = x[0:tl - 1, :]
        shift_ref[1, 0:tl - 1, :] = x[1:tl, :]
        shift_ref[1, tl - 1:tl, :] = halo_ref[0, 1:2, :]
        x2 = (jnp.dot(shift_ref[0], w2_ref[0], preferred_element_type=jnp.float32)
              + jnp.dot(x, w2_ref[1], preferred_element_type=jnp.float32)
              + jnp.dot(shift_ref[1], w2_ref[2], preferred_element_type=jnp.float32)
              + b2_ref[...])

    # --- gated combination (Dropout p=0.0 -> identity); GELU in f32 ---
    g1 = _gelu(x1, approx_gelu)
    g2 = _gelu(x2, approx_gelu)
    comb = x1 * g2 + x2 * g1                        # (TILE_L, H_pad) f32

    # --- conv3: pointwise (k=1) back to C; bf16 operand, f32 accumulate ---
    y = (jnp.dot(comb.astype(w3_ref.dtype), w3_ref[...],
                 preferred_element_type=jnp.float32) + b3_ref[...])
    o_ref[0] = y.astype(o_ref.dtype)


def _plan_tiles(L, C_pad, H_pad, comp_isz, out_isz, max_tile_l):
    """Pick TILE_L from a VMEM working-set budget and balance the tiles."""
    weight_bytes = 5 * C_pad * H_pad * comp_isz + (2 * H_pad + C_pad) * 4
    per_row = (2 * C_pad * comp_isz      # x tile (double-buffered)
               + 2 * C_pad * out_isz     # out tile (double-buffered)
               + 3 * C_pad * comp_isz    # shifted-tap scratch
               + 5 * H_pad * 4           # x1, x2, g1, g2, comb (f32)
               + H_pad * comp_isz        # comb cast for conv3
               + C_pad * 4)              # y (f32)
    budget = 40 << 20                    # working-set target; fits v7x 64 MiB VMEM
    avail = max(budget - weight_bytes, 8 << 20)
    t_max = max(8, min(max_tile_l, (avail // per_row) // 8 * 8))
    n_tiles = pl.cdiv(L, t_max)
    tile_l = _round_up(pl.cdiv(L, n_tiles), 8)     # balanced, sublane-aligned
    est = weight_bytes + tile_l * per_row + (1 << 20)
    vmem_limit = int(min(64 << 20, max(16 << 20, int(est * 1.25))))
    return tile_l, n_tiles, vmem_limit


def icb_forward(x, params, *, compute_dtype=jnp.bfloat16, stack_k_taps=True,
                approximate_gelu=False, max_tile_l=512):
    """x: (B, L, C_in). Returns (B, L, C_in) in x.dtype."""
    B, L, C = x.shape
    H = params["w1"].shape[1]
    out_dtype = x.dtype

    C_pad = _round_up(C, 128)                      # lane-dense channels
    H_pad = _round_up(H, 128)                      # lane-dense hidden
    comp_isz = jnp.dtype(compute_dtype).itemsize
    out_isz = jnp.dtype(out_dtype).itemsize
    tile_l, n_tiles, vmem_limit = _plan_tiles(L, C_pad, H_pad, comp_isz, out_isz,
                                              max_tile_l)
    L_pad = n_tiles * tile_l
    G = B * n_tiles                                # flattened (batch, L-tile) grid

    # --- activations: cast to compute dtype, pad only when needed ---
    xq = x.astype(compute_dtype)
    if L_pad != L or C_pad != C:
        xq = jnp.pad(xq, ((0, 0), (0, L_pad - L), (0, C_pad - C)))
    xr = xq.reshape(G, tile_l, C_pad)

    # --- one-row halos per (batch, L-tile), packed into a single array ---
    t = jnp.arange(n_tiles)
    prev_rows = t * tile_l - 1
    next_rows = (t + 1) * tile_l
    prev = xq[:, jnp.clip(prev_rows, 0, L_pad - 1), :]        # (B, n_tiles, C_pad)
    nxt = xq[:, jnp.clip(next_rows, 0, L_pad - 1), :]
    prev = jnp.where((prev_rows >= 0)[None, :, None], prev, 0.0)
    nxt = jnp.where((next_rows < L_pad)[None, :, None], nxt, 0.0)
    halo = jnp.stack([prev, nxt], axis=2).reshape(G, 2, C_pad)  # (G, 2, C_pad)

    # --- weights: zero-padded (lane-dense), cast to compute dtype; f32 biases ---
    w1 = jnp.pad(params["w1"], ((0, C_pad - C), (0, H_pad - H))).astype(compute_dtype)
    b1 = jnp.pad(params["b1"], ((0, 0), (0, H_pad - H))).astype(jnp.float32)
    w2p = jnp.pad(params["w2"],
                  ((0, 0), (0, C_pad - C), (0, H_pad - H))).astype(compute_dtype)
    w2 = w2p.reshape(3 * C_pad, H_pad) if stack_k_taps else w2p
    b2 = jnp.pad(params["b2"], ((0, 0), (0, H_pad - H))).astype(jnp.float32)
    w3 = jnp.pad(params["w3"], ((0, H_pad - H), (0, C_pad - C))).astype(compute_dtype)
    b3 = jnp.pad(params["b3"], ((0, 0), (0, C_pad - C))).astype(jnp.float32)

    def resident(shape):
        # Grid-invariant operand: constant index_map + single-buffered.
        return pl.BlockSpec(shape, lambda i, _n=len(shape): (0,) * _n,
                            pipeline_mode=pl.Buffered(1))

    if stack_k_taps:
        shift_scratch = pltpu.VMEM((tile_l, 3 * C_pad), compute_dtype)
    else:
        shift_scratch = pltpu.VMEM((2, tile_l, C_pad), compute_dtype)

    grid_spec = pltpu.PrefetchScalarGridSpec(
        num_scalar_prefetch=0,
        grid=(G,),
        in_specs=[
            pl.BlockSpec((1, tile_l, C_pad), lambda i: (i, 0, 0)),   # x tile
            pl.BlockSpec((1, 2, C_pad), lambda i: (i, 0, 0)),        # halo rows
            resident(w1.shape),                                      # w1
            resident(b1.shape),                                      # b1
            resident(w2.shape),                                      # w2 (stacked or 3-tap)
            resident(b2.shape),                                      # b2
            resident(w3.shape),                                      # w3
            resident(b3.shape),                                      # b3
        ],
        out_specs=pl.BlockSpec((1, tile_l, C_pad), lambda i: (i, 0, 0)),
        scratch_shapes=[shift_scratch],
    )

    flops = 2 * G * tile_l * C_pad * H_pad * 5          # conv1 + 3-tap conv2 + conv3
    transcendentals = 2 * G * tile_l * H_pad            # two GELUs
    bytes_accessed = (xr.size * comp_isz + halo.size * comp_isz
                      + G * tile_l * C_pad * out_isz
                      + sum(int(a.size) * a.dtype.itemsize
                            for a in (w1, b1, w2, b2, w3, b3)))

    kernel = functools.partial(icb_kernel, stack_k_taps, approximate_gelu)
    y = pl.pallas_call(
        kernel,
        out_shape=jax.ShapeDtypeStruct((G, tile_l, C_pad), out_dtype),
        grid_spec=grid_spec,
        compiler_params=pltpu.CompilerParams(
            dimension_semantics=("parallel",),
            vmem_limit_bytes=vmem_limit),
        cost_estimate=pl.CostEstimate(flops=flops,
                                      transcendentals=transcendentals,
                                      bytes_accessed=bytes_accessed),
    )(xr, halo, w1, b1, w2, b2, w3, b3)

    y = y.reshape(B, L_pad, C_pad)
    if L_pad != L or C_pad != C:
        y = y[:, :L, :C]
    return y


def init_icb_params(key, in_features, hidden_features, dtype=jnp.float32):
    """Deterministic init mimicking PyTorch Conv1d default (uniform +-1/sqrt(fan_in*k))."""
    ks = jax.random.split(key, 6)

    def u(k, shape, fan_in):
        bound = 1.0 / math.sqrt(fan_in)
        return jax.random.uniform(k, shape, dtype, -bound, bound)

    C, H = in_features, hidden_features
    return {
        # conv1: PyTorch weight (H, C, 1) -> stored as (C, H) for x @ w1
        "w1": u(ks[0], (C, H), C * 1),
        "b1": u(ks[1], (1, H), C * 1),
        # conv2: PyTorch weight (H, C, 3) -> stored as (3, C, H); tap j pairs
        # with input offset (j - 1) along L (cross-correlation, pad=1)
        "w2": u(ks[2], (3, C, H), C * 3),
        "b2": u(ks[3], (1, H), C * 3),
        # conv3: PyTorch weight (C, H, 1) -> stored as (H, C)
        "w3": u(ks[4], (H, C), H * 1),
        "b3": u(ks[5], (1, C), H * 1),
    }


def icb_reference(x, params):
    """Pure-JAX f32 reference of the same math (matches the PyTorch module)."""
    x1 = jnp.einsum("blc,ch->blh", x, params["w1"]) + params["b1"][0]
    zero = jnp.zeros_like(x[:, :1, :])
    x_prev = jnp.concatenate([zero, x[:, :-1, :]], axis=1)
    x_next = jnp.concatenate([x[:, 1:, :], zero], axis=1)
    x2 = (jnp.einsum("blc,ch->blh", x_prev, params["w2"][0])
          + jnp.einsum("blc,ch->blh", x, params["w2"][1])
          + jnp.einsum("blc,ch->blh", x_next, params["w2"][2])
          + params["b2"][0])
    g1 = jax.nn.gelu(x1, approximate=False)
    g2 = jax.nn.gelu(x2, approximate=False)
    out = x1 * g2 + x2 * g1
    return jnp.einsum("blh,hc->blc", out, params["w3"]) + params["b3"][0]


if __name__ == "__main__":
    B, L, C_in, H = 2, 8, 4, 32

    key = jax.random.PRNGKey(0)
    k_x, k_p = jax.random.split(key)
    x = jax.random.normal(k_x, (B, L, C_in), dtype=jnp.float32)
    params = init_icb_params(k_p, C_in, H)
    y_ref = icb_reference(x, params)

    # 1) f32 operands, K-stacked conv2 (bit-accurate vs the f32 reference).
    f32_stacked = jax.jit(functools.partial(icb_forward, compute_dtype=jnp.float32,
                                            stack_k_taps=True))
    y32 = jax.block_until_ready(f32_stacked(x, params))
    assert y32.shape == (B, L, C_in)
    assert jnp.allclose(y32, y_ref, atol=2e-5, rtol=2e-5), "f32 stacked mismatch"

    # 2) f32 operands, 3-matmul conv2 (v5e-style path).
    f32_split = jax.jit(functools.partial(icb_forward, compute_dtype=jnp.float32,
                                          stack_k_taps=False))
    y32s = jax.block_until_ready(f32_split(x, params))
    assert jnp.allclose(y32s, y_ref, atol=2e-5, rtol=2e-5), "f32 split mismatch"

    # 3) default: bf16 MXU operands, f32 accumulate (looser tolerance expected).
    bf16_default = jax.jit(icb_forward)
    ybf = jax.block_until_ready(bf16_default(x, params))
    assert ybf.shape == (B, L, C_in)
    assert jnp.allclose(ybf, y_ref, atol=2e-2, rtol=2e-2), "bf16 mismatch"

    print("KERNEL_OK")
</pallas_src>

<mosaic_0001>
module attributes {stable_mosaic.version = 11 : i64} {
  func.func @icb_kernel(%arg0: i32, %arg1: memref<1x8x128xf32, #tpu.memory_space<vmem>>, %arg2: memref<1x2x128xf32, #tpu.memory_space<vmem>>, %arg3: memref<128x128xf32, #tpu.memory_space<vmem>>, %arg4: memref<1x128xf32, #tpu.memory_space<vmem>>, %arg5: memref<384x128xf32, #tpu.memory_space<vmem>>, %arg6: memref<1x128xf32, #tpu.memory_space<vmem>>, %arg7: memref<128x128xf32, #tpu.memory_space<vmem>>, %arg8: memref<1x128xf32, #tpu.memory_space<vmem>>, %arg9: memref<1x8x128xf32, #tpu.memory_space<vmem>>, %arg10: memref<8x384xf32, #tpu.memory_space<vmem>>) attributes {dimension_semantics = [#tpu.dimension_semantics<parallel>], iteration_bounds = array<i64: 2>, scalar_prefetch = 0 : i64, scratch_operands = 1 : i64, tpu.core_type = #tpu.core_type<tc>, window_params = [{transform_indices = @transform_0, window_bounds = array<i64: 1, 8, 128>}, {transform_indices = @transform_1, window_bounds = array<i64: 1, 2, 128>}, {pipeline_mode = #tpu.pipeline_mode<synchronous>, transform_indices = @transform_2, window_bounds = array<i64: 128, 128>}, {pipeline_mode = #tpu.pipeline_mode<synchronous>, transform_indices = @transform_3, window_bounds = array<i64: 1, 128>}, {pipeline_mode = #tpu.pipeline_mode<synchronous>, transform_indices = @transform_4, window_bounds = array<i64: 384, 128>}, {pipeline_mode = #tpu.pipeline_mode<synchronous>, transform_indices = @transform_5, window_bounds = array<i64: 1, 128>}, {pipeline_mode = #tpu.pipeline_mode<synchronous>, transform_indices = @transform_6, window_bounds = array<i64: 128, 128>}, {pipeline_mode = #tpu.pipeline_mode<synchronous>, transform_indices = @transform_7, window_bounds = array<i64: 1, 128>}, {transform_indices = @transform_8, window_bounds = array<i64: 1, 8, 128>}]} {
    %c0 = arith.constant 0 : index
    %c0_0 = arith.constant 0 : index
    %c0_1 = arith.constant 0 : index
    %0 = vector.load %arg1[%c0, %c0_0, %c0_1] : memref<1x8x128xf32, #tpu.memory_space<vmem>>, vector<1x8x128xf32>
    %1 = vector.shape_cast %0 : vector<1x8x128xf32> to vector<8x128xf32>
    %c0_2 = arith.constant 0 : index
    %c0_3 = arith.constant 0 : index
    %2 = vector.load %arg3[%c0_2, %c0_3] : memref<128x128xf32, #tpu.memory_space<vmem>>, vector<128x128xf32>
    %cst = arith.constant dense<0.000000e+00> : vector<8x128xf32>
    %3 = tpu.matmul %1, %2, %cst {dimension_numbers = #tpu.dot_dimension_numbers<[1], [0], [0], [1], [0, 0, 1, 1], [], []>} : vector<8x128xf32>, vector<128x128xf32>, vector<8x128xf32> -> vector<8x128xf32>
    %c0_4 = arith.constant 0 : index
    %c0_5 = arith.constant 0 : index
    %4 = vector.load %arg4[%c0_4, %c0_5] : memref<1x128xf32, #tpu.memory_space<vmem>>, vector<1x128xf32>
    %5 = vector.broadcast %4 : vector<1x128xf32> to vector<8x128xf32>
    %6 = arith.addf %3, %5 : vector<8x128xf32>
    %c0_6 = arith.constant 0 : index
    %c128 = arith.constant 128 : index
    %7 = vector.load %arg10[%c0_6, %c128] : memref<8x384xf32, #tpu.memory_space<vmem>>, vector<8x128xf32>
    tpu.vector_store %arg10[%c0_6, %c128], %1 {strides = array<i32>} : memref<8x384xf32, #tpu.memory_space<vmem>>, vector<8x128xf32>,
    %c0_7 = arith.constant 0 : index
    %c0_8 = arith.constant 0 : index
    %c0_9 = arith.constant 0 : index
    %8 = vector.load %arg2[%c0_7, %c0_8, %c0_9] : memref<1x2x128xf32, #tpu.memory_space<vmem>>, vector<1x1x128xf32>
    %9 = vector.shape_cast %8 : vector<1x1x128xf32> to vector<1x128xf32>
    %c0_10 = arith.constant 0 : index
    %c0_11 = arith.constant 0 : index
    %10 = vector.load %arg10[%c0_10, %c0_11] : memref<8x384xf32, #tpu.memory_space<vmem>>, vector<1x128xf32>
    tpu.vector_store %arg10[%c0_10, %c0_11], %9 {strides = array<i32>} : memref<8x384xf32, #tpu.memory_space<vmem>>, vector<1x128xf32>,
    %11 = vector.extract_strided_slice %1 {offsets = [0, 0], sizes = [7, 128], strides = [1, 1]} : vector<8x128xf32> to vector<7x128xf32>
    %c1 = arith.constant 1 : index
    %c0_12 = arith.constant 0 : index
    %12 = vector.load %arg10[%c1, %c0_12] : memref<8x384xf32, #tpu.memory_space<vmem>>, vector<7x128xf32>
    tpu.vector_store %arg10[%c1, %c0_12], %11 {strides = array<i32>} : memref<8x384xf32, #tpu.memory_space<vmem>>, vector<7x128xf32>,
    %13 = vector.extract_strided_slice %1 {offsets = [1, 0], sizes = [7, 128], strides = [1, 1]} : vector<8x128xf32> to vector<7x128xf32>
    %c0_13 = arith.constant 0 : index
    %c256 = arith.constant 256 : index
    %14 = vector.load %arg10[%c0_13, %c256] : memref<8x384xf32, #tpu.memory_space<vmem>>, vector<7x128xf32>
    tpu.vector_store %arg10[%c0_13, %c256], %13 {strides = array<i32>} : memref<8x384xf32, #tpu.memory_space<vmem>>, vector<7x128xf32>,
    %c0_14 = arith.constant 0 : index
    %c1_15 = arith.constant 1 : index
    %c0_16 = arith.constant 0 : index
    %15 = vector.load %arg2[%c0_14, %c1_15, %c0_16] : memref<1x2x128xf32, #tpu.memory_space<vmem>>, vector<1x1x128xf32>
    %16 = vector.shape_cast %15 : vector<1x1x128xf32> to vector<1x128xf32>
    %c7 = arith.constant 7 : index
    %c256_17 = arith.constant 256 : index
    %17 = vector.load %arg10[%c7, %c256_17] : memref<8x384xf32, #tpu.memory_space<vmem>>, vector<1x128xf32>
    tpu.vector_store %arg10[%c7, %c256_17], %16 {strides = array<i32>} : memref<8x384xf32, #tpu.memory_space<vmem>>, vector<1x128xf32>,
    %c0_18 = arith.constant 0 : index
    %c0_19 = arith.constant 0 : index
    %18 = vector.load %arg10[%c0_18, %c0_19] : memref<8x384xf32, #tpu.memory_space<vmem>>, vector<8x384xf32>
    %c0_20 = arith.constant 0 : index
    %c0_21 = arith.constant 0 : index
    %19 = vector.load %arg5[%c0_20, %c0_21] : memref<384x128xf32, #tpu.memory_space<vmem>>, vector<384x128xf32>
    %cst_22 = arith.constant dense<0.000000e+00> : vector<8x128xf32>
    %20 = tpu.matmul %18, %19, %cst_22 {dimension_numbers = #tpu.dot_dimension_numbers<[1], [0], [0], [1], [0, 0, 1, 1], [], []>} : vector<8x384xf32>, vector<384x128xf32>, vector<8x128xf32> -> vector<8x128xf32>
    %c0_23 = arith.constant 0 : index
    %c0_24 = arith.constant 0 : index
    %21 = vector.load %arg6[%c0_23, %c0_24] : memref<1x128xf32, #tpu.memory_space<vmem>>, vector<1x128xf32>
    %22 = vector.broadcast %21 : vector<1x128xf32> to vector<8x128xf32>
    %23 = arith.addf %20, %22 : vector<8x128xf32>
    %cst_25 = arith.constant 5.000000e-01 : f32
    %24 = vector.broadcast %cst_25 : f32 to vector<8x128xf32>
    %25 = arith.mulf %24, %6 : vector<8x128xf32>
    %cst_26 = arith.constant 0.707106769 : f32
    %26 = vector.broadcast %cst_26 : f32 to vector<8x128xf32>
    %27 = arith.mulf %6, %26 : vector<8x128xf32>
    %28 = math.erf %27 : vector<8x128xf32>
    %cst_27 = arith.constant 1.000000e+00 : f32
    %29 = vector.broadcast %cst_27 : f32 to vector<8x128xf32>
    %30 = arith.addf %29, %28 : vector<8x128xf32>
    %31 = arith.mulf %25, %30 : vector<8x128xf32>
    %cst_28 = arith.constant 5.000000e-01 : f32
    %32 = vector.broadcast %cst_28 : f32 to vector<8x128xf32>
    %33 = arith.mulf %32, %23 : vector<8x128xf32>
    %cst_29 = arith.constant 0.707106769 : f32
    %34 = vector.broadcast %cst_29 : f32 to vector<8x128xf32>
    %35 = arith.mulf %23, %34 : vector<8x128xf32>
    %36 = math.erf %35 : vector<8x128xf32>
    %cst_30 = arith.constant 1.000000e+00 : f32
    %37 = vector.broadcast %cst_30 : f32 to vector<8x128xf32>
    %38 = arith.addf %37, %36 : vector<8x128xf32>
    %39 = arith.mulf %33, %38 : vector<8x128xf32>
    %40 = arith.mulf %6, %39 : vector<8x128xf32>
    %41 = arith.mulf %23, %31 : vector<8x128xf32>
    %42 = arith.addf %40, %41 : vector<8x128xf32>
    %c0_31 = arith.constant 0 : index
    %c0_32 = arith.constant 0 : index
    %43 = vector.load %arg7[%c0_31, %c0_32] : memref<128x128xf32, #tpu.memory_space<vmem>>, vector<128x128xf32>
    %cst_33 = arith.constant dense<0.000000e+00> : vector<8x128xf32>
    %44 = tpu.matmul %42, %43, %cst_33 {dimension_numbers = #tpu.dot_dimension_numbers<[1], [0], [0], [1], [0, 0, 1, 1], [], []>} : vector<8x128xf32>, vector<128x128xf32>, vector<8x128xf32> -> vector<8x128xf32>
    %c0_34 = arith.constant 0 : index
    %c0_35 = arith.constant 0 : index
    %45 = vector.load %arg8[%c0_34, %c0_35] : memref<1x128xf32, #tpu.memory_space<vmem>>, vector<1x128xf32>
    %46 = vector.broadcast %45 : vector<1x128xf32> to vector<8x128xf32>
    %47 = arith.addf %44, %46 : vector<8x128xf32>
    %c0_36 = arith.constant 0 : index
    %c0_37 = arith.constant 0 : index
    %c0_38 = arith.constant 0 : index
    %48 = vector.load %arg9[%c0_36, %c0_37, %c0_38] : memref<1x8x128xf32, #tpu.memory_space<vmem>>, vector<1x8x128xf32>
    %49 = vector.shape_cast %48 : vector<1x8x128xf32> to vector<8x128xf32>
    %50 = vector.shape_cast %47 : vector<8x128xf32> to vector<1x8x128xf32>
    tpu.vector_store %arg9[%c0_36, %c0_37, %c0_38], %50 {strides = array<i32>} : memref<1x8x128xf32, #tpu.memory_space<vmem>>, vector<1x8x128xf32>,
    return
  }
  func.func @transform_0(%arg0: i32) -> (i32, i32, i32) {
    %c0_i32 = arith.constant 0 : i32
    %c0_i32_0 = arith.constant 0 : i32
    %c0_i32_1 = arith.constant 0 : i32
    return %arg0, %c0_i32, %c0_i32_0 : i32, i32, i32
  }
  func.func @transform_1(%arg0: i32) -> (i32, i32, i32) {
    %c0_i32 = arith.constant 0 : i32
    %c0_i32_0 = arith.constant 0 : i32
    %c0_i32_1 = arith.constant 0 : i32
    return %arg0, %c0_i32, %c0_i32_0 : i32, i32, i32
  }
  func.func @transform_2(%arg0: i32) -> (i32, i32) {
    %c0_i32 = arith.constant 0 : i32
    %c0_i32_0 = arith.constant 0 : i32
    %c0_i32_1 = arith.constant 0 : i32
    return %c0_i32, %c0_i32_0 : i32, i32
  }
  func.func @transform_3(%arg0: i32) -> (i32, i32) {
    %c0_i32 = arith.constant 0 : i32
    %c0_i32_0 = arith.constant 0 : i32
    %c0_i32_1 = arith.constant 0 : i32
    return %c0_i32, %c0_i32_0 : i32, i32
  }
  func.func @transform_4(%arg0: i32) -> (i32, i32) {
    %c0_i32 = arith.constant 0 : i32
    %c0_i32_0 = arith.constant 0 : i32
    %c0_i32_1 = arith.constant 0 : i32
    return %c0_i32, %c0_i32_0 : i32, i32
  }
  func.func @transform_5(%arg0: i32) -> (i32, i32) {
    %c0_i32 = arith.constant 0 : i32
    %c0_i32_0 = arith.constant 0 : i32
    %c0_i32_1 = arith.constant 0 : i32
    return %c0_i32, %c0_i32_0 : i32, i32
  }
  func.func @transform_6(%arg0: i32) -> (i32, i32) {
    %c0_i32 = arith.constant 0 : i32
    %c0_i32_0 = arith.constant 0 : i32
    %c0_i32_1 = arith.constant 0 : i32
    return %c0_i32, %c0_i32_0 : i32, i32
  }
  func.func @transform_7(%arg0: i32) -> (i32, i32) {
    %c0_i32 = arith.constant 0 : i32
    %c0_i32_0 = arith.constant 0 : i32
    %c0_i32_1 = arith.constant 0 : i32
    return %c0_i32, %c0_i32_0 : i32, i32
  }
  func.func @transform_8(%arg0: i32) -> (i32, i32, i32) {
    %c0_i32 = arith.constant 0 : i32
    %c0_i32_0 = arith.constant 0 : i32
    %c0_i32_1 = arith.constant 0 : i32
    return %arg0, %c0_i32, %c0_i32_0 : i32, i32, i32
  }
}

</mosaic_0001>

<bundles_post_ra>
// kernel: icb_forward.1
= control target key start
LH: loop header
LB: loop body
LE: loop exit
PB: predicated region body
PF: predicated region fallthrough
CT: control target
= control target key end

     0   :  { %s1067_s27 = smov 0   ;;  %s1404_s0 = inlined_call_operand.vmem [shape: f32[2,8,128], index: 0, kind: input, shape index: {}]   ;;  %s1405_s1 = inlined_call_operand.vmem [shape: f32[2,2,128], index: 1, kind: input, shape index: {}]   ;;  %s1406_s2 = inlined_call_operand.vmem [shape: f32[128,128], index: 2, kind: input, shape index: {}]   ;;  %s1407_s3 = inlined_call_operand.vmem [shape: f32[1,128], index: 3, kind: input, shape index: {}]   ;;  %s1408_s4 = inlined_call_operand.vmem [shape: f32[384,128], index: 4, kind: input, shape index: {}]   ;;  %s1409_s5 = inlined_call_operand.vmem [shape: f32[1,128], index: 5, kind: input, shape index: {}]   ;;  %s1410_s6 = inlined_call_operand.vmem [shape: f32[128,128], index: 6, kind: input, shape index: {}]   ;;  %s1411_s7 = inlined_call_operand.vmem [shape: f32[1,128], index: 7, kind: input, shape index: {}]   ;;  %s1412_s8 = inlined_call_operand.vmem [shape: f32[2,8,128], index: 8, kind: output, shape index: {}]  }
   0x1 LB: > { %s794_s28 = sadd.s32 4294967295, %s1018_s27   ;;  %p798_p0 = scmp.ge.s32.totalorder %s1018_s27, 1  ;;  %s1018_s27 = sphi %s1067_s27, %s18_s27  }
   0x2   : > { %p270_p1 = scmp.lt.s32.totalorder %s1018_s27, 3 }
   0x4   : > { %p271_p2 = pnand %p798_p0, %p270_p1 }
   0x5   : > { %p306_p3 = scmp.lt.s32.totalorder (!%p271_p2), %s794_s28, 1 }
   0x6   : > { %274 = sbr.rel (%p271_p2) target bundleno = 491 (0x1eb), region = 52 }
   0xb   : > { %v334_v0 = vld [vmem:[%s1406_s2 + $0x78] sm:$0xff]  ;;  %v1020_v1 = vmov 0.0   ;;  %v333_v2 = vld [vmem:[%s1406_s2 + $0x70] sm:$0xff]  ;;  %vm1021_vm0 = vmmov 0   ;;  %s1414_s28 = smov (!%p306_p3, %s794_s28), 1  ;;  %v332_v3 = vld [vmem:[%s1406_s2 + $0x68] sm:$0xff] }
   0xc   : > { %893 = vmatprep.subr.mxu0 %v1020_v1  ;;  %925 = vmatprep.mubr.msk.f32.mxu0 %vm1021_vm0, %v1020_v1  ;;  %v458_v4 = vld [vmem:[%s1408_s4 + $0xf8] sm:$0xff]  ;;  %s799_s17 = sshll.u32 %s1414_s28, 3  ;;  %s800_s18 = sshll.u32 %s1414_s28, 1  ;;  %v331_v6 = vld [vmem:[%s1406_s2 + $0x60] sm:$0xff]  ;;  %v457_v7 = vld [vmem:[%s1408_s4 + $0xf0] sm:$0xff] }
   0xd   : > { %894 = vmatpush3.msra.mxu0 %v334_v0  ;;  %v442_v5 = vld [vmem:[%s1408_s4 + $0x78] sm:$0xff]  ;;  %824 = vmatprep.subr.mxu1 %v458_v4  ;;  %v441_v8 = vld [vmem:[%s1408_s4 + $0x70] sm:$0xff]  ;;  %s309_s29 = scalar_lea.vmem %s1404_s0, %s799_s17  ;;  %s313_s10 = scalar_lea.vmem %s1405_s1, %s800_s18  ;;  %v456_v9 = vld [vmem:[%s1408_s4 + $0xe8] sm:$0xff] }
   0xe   : > { %895 = vmatprep.subr.mxu0 %v1020_v1  ;;  %825 = vmatpush3.msra.mxu1 %v442_v5  ;;  %v330_v10 = vld [vmem:[%s1406_s2 + $0x58] sm:$0xff]  ;;  %v440_v11 = vld [vmem:[%s1408_s4 + $0x68] sm:$0xff]  ;;  %v455_v12 = vld [vmem:[%s1408_s4 + $0xe0] sm:$0xff]  ;;  %s317_s11 = scalar_lea.vmem %s1412_s8, %s799_s17 }
   0xf   : > { %896 = vmatpush3.msra.mxu0 %v333_v2  ;;  %826 = vmatprep.subr.mxu1 %v457_v7  ;;  %v1129_v13 = vld [vmem:[%s309_s29] sm:$0xff]  ;;  %v329_v16 = vld [vmem:[%s1406_s2 + $0x50] sm:$0xff]  ;;  %v454_v20 = vld [vmem:[%s1408_s4 + $0xd8] sm:$0xff] }
  0x10   : > { %897 = vmatprep.subr.mxu0 %v1020_v1  ;;  %827 = vmatpush3.msra.mxu1 %v441_v8  ;;  %v413_v14 = vld [vmem:[%s313_s10] sm:$0x1]  ;;  %v422_v15 = vld [vmem:[%s313_s10 + $0x1] sm:$0x1]  ;;  %v416_v18 = vrot.slane %v1129_v13, 7  ;;  %v419_v19 = vrot.slane %v1129_v13, 1 }
  0x11   : > { %898 = vmatpush3.msra.mxu0 %v332_v3  ;;  %828 = vmatprep.subr.mxu1 %v456_v9  ;;  %v439_v17 = vld [vmem:[%s1408_s4 + $0x60] sm:$0xff]  ;;  %414 = vst [vmem:[#allocation2] sm:$0x1] %v413_v14  ;;  %423 = vst [vmem:[#allocation2 + $0x17] sm:$0x1] %v422_v15  ;;  %v328_v21 = vld [vmem:[%s1406_s2 + $0x48] sm:$0xff] }
  0x12   : > { %899 = vmatprep.subr.mxu0 %v1020_v1  ;;  %829 = vmatpush3.msra.mxu1 %v440_v11  ;;  %418 = vst [vmem:[#allocation2] sm:$0xfe] %v416_v18  ;;  %421 = vst [vmem:[#allocation2 + $0x10] sm:$0x7f] %v419_v19  ;;  %v438_v22 = vld [vmem:[%s1408_s4 + $0x58] sm:$0xff]  ;;  %v453_v23 = vld [vmem:[%s1408_s4 + $0xd0] sm:$0xff] }
  0x13   : > { %900 = vmatpush3.msra.mxu0 %v331_v6  ;;  %830 = vmatprep.subr.mxu1 %v455_v12  ;;  %v327_v24 = vld [vmem:[%s1406_s2 + $0x40] sm:$0xff]  ;;  %v437_v25 = vld [vmem:[%s1408_s4 + $0x50] sm:$0xff]  ;;  %v452_v26 = vld [vmem:[%s1408_s4 + $0xc8] sm:$0xff] }
  0x14   : > { %901 = vmatprep.subr.mxu0 %v1020_v1  ;;  %831 = vmatpush3.msra.mxu1 %v439_v17  ;;  %v326_v27 = vld [vmem:[%s1406_s2 + $0x38] sm:$0xff]  ;;  %v436_v28 = vld [vmem:[%s1408_s4 + $0x48] sm:$0xff]  ;;  %v451_v29 = vld [vmem:[%s1408_s4 + $0xc0] sm:$0xff] }
  0x15   : > { %902 = vmatpush3.msra.mxu0 %v330_v10  ;;  %832 = vmatprep.subr.mxu1 %v454_v20  ;;  %v325_v30 = vld [vmem:[%s1406_s2 + $0x30] sm:$0xff]  ;;  %v435_v31 = vld [vmem:[%s1408_s4 + $0x40] sm:$0xff]  ;;  %v450_v32 = vld [vmem:[%s1408_s4 + $0xb8] sm:$0xff] }
  0x16   : > { %903 = vmatprep.subr.mxu0 %v1020_v1  ;;  %833 = vmatpush3.msra.mxu1 %v438_v22  ;;  %v324_v33 = vld [vmem:[%s1406_s2 + $0x28] sm:$0xff]  ;;  %v434_v34 = vld [vmem:[%s1408_s4 + $0x38] sm:$0xff]  ;;  %v449_v35 = vld [vmem:[%s1408_s4 + $0xb0] sm:$0xff] }
  0x17   : > { %904 = vmatpush3.msra.mxu0 %v329_v16  ;;  %834 = vmatprep.subr.mxu1 %v453_v23  ;;  %v323_v36 = vld [vmem:[%s1406_s2 + $0x20] sm:$0xff]  ;;  %v433_v37 = vld [vmem:[%s1408_s4 + $0x30] sm:$0xff]  ;;  %v448_v38 = vld [vmem:[%s1408_s4 + $0xa8] sm:$0xff] }
  0x18   : > { %905 = vmatprep.subr.mxu0 %v1020_v1  ;;  %835 = vmatpush3.msra.mxu1 %v437_v25  ;;  %v322_v39 = vld [vmem:[%s1406_s2 + $0x18] sm:$0xff]  ;;  %v432_v40 = vld [vmem:[%s1408_s4 + $0x28] sm:$0xff]  ;;  %v447_v41 = vld [vmem:[%s1408_s4 + $0xa0] sm:$0xff] }
  0x19   : > { %906 = vmatpush3.msra.mxu0 %v328_v21  ;;  %836 = vmatprep.subr.mxu1 %v452_v26  ;;  %v321_v42 = vld [vmem:[%s1406_s2 + $0x10] sm:$0xff]  ;;  %v431_v43 = vld [vmem:[%s1408_s4 + $0x20] sm:$0xff]  ;;  %v446_v44 = vld [vmem:[%s1408_s4 + $0x98] sm:$0xff] }
  0x1a   : > { %907 = vmatprep.subr.mxu0 %v1020_v1  ;;  %837 = vmatpush3.msra.mxu1 %v436_v28  ;;  %v320_v45 = vld [vmem:[%s1406_s2 + $0x8] sm:$0xff]  ;;  %v430_v46 = vld [vmem:[%s1408_s4 + $0x18] sm:$0xff]  ;;  %v445_v47 = vld [vmem:[%s1408_s4 + $0x90] sm:$0xff] }
  0x1b   : > { %908 = vmatpush3.msra.mxu0 %v327_v24  ;;  %838 = vmatprep.subr.mxu1 %v451_v29  ;;  %v319_v48 = vld [vmem:[%s1406_s2] sm:$0xff]  ;;  %v429_v49 = vld [vmem:[%s1408_s4 + $0x10] sm:$0xff]  ;;  %v474_v50 = vld [vmem:[%s1408_s4 + $0x178] sm:$0xff] }
  0x1c   : > { %909 = vmatprep.subr.mxu0 %v1020_v1  ;;  %839 = vmatpush3.msra.mxu1 %v435_v31  ;;  %v444_v51 = vld [vmem:[%s1408_s4 + $0x88] sm:$0xff]  ;;  %v473_v53 = vld [vmem:[%s1408_s4 + $0x170] sm:$0xff]  ;;  %v443_v54 = vld [vmem:[%s1408_s4 + $0x80] sm:$0xff] }
  0x1d   : > { %910 = vmatpush3.msra.mxu0 %v326_v27  ;;  %840 = vmatprep.subr.mxu1 %v450_v32  ;;  %v428_v52 = vld [vmem:[%s1408_s4 + $0x8] sm:$0xff]  ;;  %v427_v55 = vld [vmem:[%s1408_s4] sm:$0xff]  ;;  %v470_v59 = vld [vmem:[%s1408_s4 + $0x158] sm:$0xff] }
  0x1e   : > { %911 = vmatprep.subr.mxu0 %v1020_v1  ;;  %841 = vmatpush3.msra.mxu1 %v434_v34  ;;  %v472_v56 = vld [vmem:[%s1408_s4 + $0x168] sm:$0xff]  ;;  %v424_v57 = vld [vmem:[#allocation2] sm:$0xff]  ;;  %v469_v60 = vld [vmem:[%s1408_s4 + $0x150] sm:$0xff] }
  0x1f   : > { %912 = vmatpush3.msra.mxu0 %v325_v30  ;;  %842 = vmatprep.subr.mxu1 %v449_v35  ;;  %v471_v58 = vld [vmem:[%s1408_s4 + $0x160] sm:$0xff]  ;;  %v468_v61 = vld [vmem:[%s1408_s4 + $0x148] sm:$0xff]  ;;  %v466_v63 = vld [vmem:[%s1408_s4 + $0x138] sm:$0xff] }
  0x20   : > { %913 = vmatprep.subr.mxu0 %v1020_v1  ;;  %843 = vmatpush3.msra.mxu1 %v433_v37  ;;  %v467_v62 = vld [vmem:[%s1408_s4 + $0x140] sm:$0xff]  ;;  %v465_v0 = vld [vmem:[%s1408_s4 + $0x130] sm:$0xff]  ;;  %v464_v2 = vld [vmem:[%s1408_s4 + $0x128] sm:$0xff] }
  0x21   : > { %914 = vmatpush3.msra.mxu0 %v324_v33  ;;  %844 = vmatprep.subr.mxu1 %v448_v38  ;;  %v463_v3 = vld [vmem:[%s1408_s4 + $0x120] sm:$0xff]  ;;  %v462_v4 = vld [vmem:[%s1408_s4 + $0x118] sm:$0xff]  ;;  %v461_v5 = vld [vmem:[%s1408_s4 + $0x110] sm:$0xff] }
  0x22   : > { %915 = vmatprep.subr.mxu0 %v1020_v1  ;;  %845 = vmatpush3.msra.mxu1 %v432_v40  ;;  %v460_v6 = vld [vmem:[%s1408_s4 + $0x108] sm:$0xff]  ;;  %v459_v7 = vld [vmem:[%s1408_s4 + $0x100] sm:$0xff]  ;;  %v426_v8 = vld [vmem:[#allocation2 + $0x10] sm:$0xff] }
  0x23   : > { %916 = vmatpush3.msra.mxu0 %v323_v36  ;;  %846 = vmatprep.subr.mxu1 %v447_v41  ;;  %v650_v9 = vld [vmem:[%s1410_s6 + $0x78] sm:$0xff]  ;;  %v649_v10 = vld [vmem:[%s1410_s6 + $0x70] sm:$0xff]  ;;  %v648_v11 = vld [vmem:[%s1410_s6 + $0x68] sm:$0xff] }
  0x24   : > { %917 = vmatprep.subr.mxu0 %v1020_v1  ;;  %847 = vmatpush3.msra.mxu1 %v431_v43  ;;  %v647_v12 = vld [vmem:[%s1410_s6 + $0x60] sm:$0xff]  ;;  %v645_v14 = vld [vmem:[%s1410_s6 + $0x50] sm:$0xff]  ;;  %v644_v15 = vld [vmem:[%s1410_s6 + $0x48] sm:$0xff] }
  0x25   : > { %918 = vmatpush3.msra.mxu0 %v322_v39  ;;  %848 = vmatprep.subr.mxu1 %v446_v44  ;;  %v643_v16 = vld [vmem:[%s1410_s6 + $0x40] sm:$0xff]  ;;  %v642_v17 = vld [vmem:[%s1410_s6 + $0x38] sm:$0xff]  ;;  %v641_v18 = vld [vmem:[%s1410_s6 + $0x30] sm:$0xff] }
  0x26   : > { %919 = vmatprep.subr.mxu0 %v1020_v1  ;;  %849 = vmatpush3.msra.mxu1 %v430_v46  ;;  %v640_v19 = vld [vmem:[%s1410_s6 + $0x28] sm:$0xff]  ;;  %v639_v20 = vld [vmem:[%s1410_s6 + $0x20] sm:$0xff]  ;;  %v638_v21 = vld [vmem:[%s1410_s6 + $0x18] sm:$0xff] }
  0x27   : > { %920 = vmatpush3.msra.mxu0 %v321_v42  ;;  %850 = vmatprep.subr.mxu1 %v445_v47  ;;  %v637_v22 = vld [vmem:[%s1410_s6 + $0x10] sm:$0xff]  ;;  %v636_v23 = vld [vmem:[%s1410_s6 + $0x8] sm:$0xff]  ;;  %v635_v24 = vld [vmem:[%s1410_s6] sm:$0xff] }
  0x28   : > { %921 = vmatprep.subr.mxu0 %v1020_v1  ;;  %851 = vmatpush3.msra.mxu1 %v429_v49  ;;  %v802_v28 = vld [vmem:[%s1407_s3] ss:$0 sm:$0xff] }
  0x29   : > { %922 = vmatpush3.msra.mxu0 %v320_v45  ;;  %852 = vmatprep.subr.mxu1 %v444_v51  ;;  %v803_v32 = vld [vmem:[%s1409_s5] ss:$0 sm:$0xff] }
  0x2a   : > { %923 = vmatprep.subr.mxu0 %v1020_v1  ;;  %853 = vmatpush3.msra.mxu1 %v428_v52  ;;  %v804_v49 = vld [vmem:[%s1411_s7] ss:$0 sm:$0xff] }
  0x2b   : > { %924 = vmatpush3.msra.mxu0 %v319_v48  ;;  %854 = vmatprep.subr.mxu1 %v443_v54 }
  0x2c   : > { %926 = vmatmul.mubr.f32.vlgmr.msra.gmra.mxu0 %v1129_v13  ;;  %928 = vmatprep.subr.mxu0 %v1020_v1 }
  0x2d   : > { %929 = vmatpush3.msra.mxu0 %v474_v50  ;;  %855 = vmatpush3.msra.mxu1 %v427_v55 }
  0x2e   : > { %930 = vmatprep.subr.mxu0 %v1020_v1  ;;  %546 = vmatprep.mubr.f32.mxu1 %v1129_v13  ;;  %v646_v13 = vld [vmem:[%s1410_s6 + $0x58] sm:$0xff] }
  0x2f   : > { %931 = vmatpush3.msra.mxu0 %v473_v53  ;;  %547 = vmatmul.mubr.f32.vlgmr.msra.gmra.mxu1 %v424_v57 }
  0x30   : > { %932 = vmatprep.subr.mxu0 %v1020_v1  ;;  %960 = vmatprep.mubr.msk.f32.mxu0 %vm1021_vm0, %v1020_v1 }
  0x31   : > { %933 = vmatpush3.msra.mxu0 %v472_v56  ;;  %963 = vmatprep.subr.mxu1 %v1020_v1 }
  0x32   : > { %934 = vmatprep.subr.mxu0 %v1020_v1  ;;  %995 = vmatprep.mubr.msk.f32.mxu1 %vm1021_vm0, %v1020_v1 }
  0x33   : > { %935 = vmatpush3.msra.mxu0 %v471_v58  ;;  %964 = vmatpush3.msra.mxu1 %v650_v9 }
  0x34   : > { %936 = vmatprep.subr.mxu0 %v1020_v1  ;;  %965 = vmatprep.subr.mxu1 %v1020_v1 }
  0x35   : > { %937 = vmatpush3.msra.mxu0 %v470_v59  ;;  %966 = vmatpush3.msra.mxu1 %v649_v10 }
  0x36   : > { %938 = vmatprep.subr.mxu0 %v1020_v1  ;;  %967 = vmatprep.subr.mxu1 %v1020_v1 }
  0x37   : > { %939 = vmatpush3.msra.mxu0 %v469_v60  ;;  %968 = vmatpush3.msra.mxu1 %v648_v11 }
  0x38   : > { %940 = vmatprep.subr.mxu0 %v1020_v1  ;;  %969 = vmatprep.subr.mxu1 %v1020_v1 }
  0x39   : > { %941 = vmatpush3.msra.mxu0 %v468_v61  ;;  %970 = vmatpush3.msra.mxu1 %v647_v12 }
  0x3a   : > { %942 = vmatprep.subr.mxu0 %v1020_v1  ;;  %971 = vmatprep.subr.mxu1 %v1020_v1 }
  0x3b   : > { %943 = vmatpush3.msra.mxu0 %v467_v62  ;;  %972 = vmatpush3.msra.mxu1 %v646_v13 }
  0x3c   : > { %944 = vmatprep.subr.mxu0 %v1020_v1  ;;  %973 = vmatprep.subr.mxu1 %v1020_v1 }
  0x3d   : > { %945 = vmatpush3.msra.mxu0 %v466_v63  ;;  %974 = vmatpush3.msra.mxu1 %v645_v14 }
  0x3e   : > { %946 = vmatprep.subr.mxu0 %v1020_v1  ;;  %975 = vmatprep.subr.mxu1 %v1020_v1 }
  0x3f   : > { %947 = vmatpush3.msra.mxu0 %v465_v0  ;;  %976 = vmatpush3.msra.mxu1 %v644_v15 }
  0x40   : > { %948 = vmatprep.subr.mxu0 %v1020_v1  ;;  %977 = vmatprep.subr.mxu1 %v1020_v1 }
  0x41   : > { %949 = vmatpush3.msra.mxu0 %v464_v2  ;;  %978 = vmatpush3.msra.mxu1 %v643_v16 }
  0x42   : > { %950 = vmatprep.subr.mxu0 %v1020_v1  ;;  %979 = vmatprep.subr.mxu1 %v1020_v1 }
  0x43   : > { %951 = vmatpush3.msra.mxu0 %v463_v3  ;;  %980 = vmatpush3.msra.mxu1 %v642_v17 }
  0x44   : > { %952 = vmatprep.subr.mxu0 %v1020_v1  ;;  %981 = vmatprep.subr.mxu1 %v1020_v1 }
  0x45   : > { %953 = vmatpush3.msra.mxu0 %v462_v4  ;;  %982 = vmatpush3.msra.mxu1 %v641_v18 }
  0x46   : > { %954 = vmatprep.subr.mxu0 %v1020_v1  ;;  %983 = vmatprep.subr.mxu1 %v1020_v1 }
  0x47   : > { %955 = vmatpush3.msra.mxu0 %v461_v5  ;;  %984 = vmatpush3.msra.mxu1 %v640_v19 }
  0x48   : > { %956 = vmatprep.subr.mxu0 %v1020_v1  ;;  %985 = vmatprep.subr.mxu1 %v1020_v1 }
  0x49   : > { %957 = vmatpush3.msra.mxu0 %v460_v6  ;;  %986 = vmatpush3.msra.mxu1 %v639_v20 }
  0x4a   : > { %958 = vmatprep.subr.mxu0 %v1020_v1  ;;  %987 = vmatprep.subr.mxu1 %v1020_v1 }
  0x4b   : > { %959 = vmatpush3.msra.mxu0 %v459_v7  ;;  %988 = vmatpush3.msra.mxu1 %v638_v21 }
  0x4c   : > { %961 = vmatmul.mubr.f32.vlgmr.msra.gmra.mxu0 %v426_v8  ;;  %989 = vmatprep.subr.mxu1 %v1020_v1 }
  0x4d   : > { %990 = vmatpush3.msra.mxu1 %v637_v22 }
  0x4e   : > { %991 = vmatprep.subr.mxu1 %v1020_v1 }
  0x4f   : > { %992 = vmatpush3.msra.mxu1 %v636_v23 }
  0x50   : > { %993 = vmatprep.subr.mxu1 %v1020_v1 }
  0x51   : > { %994 = vmatpush3.msra.mxu1 %v635_v24 }
  0xec   : > { %v408_v25 = vpop.f32.mrf.mxu0 }
  0xed   : > { %v409_v30 = vadd.f32 %v802_v28, %v408_v25 }
  0xee   : > { %v927_v26 = vpop.f32.mrf.mxu0 }
  0xef   : > { %v856_v27 = vpop.f32.mrf.mxu1  ;;  %v623_v1 = vmul.f32 0.70710677, %v409_v30  ;;  %v622_v41 = vmul.f32 0.5, %v409_v30 }
  0xf1   : > { %v857_v29 = vpop.f32.mrf.mxu1  ;;  %1008 = verf.f32 %v623_v1 }
  0xf2   : > { %v858_v31 = vadd.f32 %v857_v29, %v856_v27 }
  0xf4   : > { %v549_v33 = vadd.f32 %v858_v31, %v803_v32 }
  0xfe   : > { %v1009_v38 = vpop.eup %1008 }
  0xff   : > { %v625_v39 = vadd.f32 1.0, %v1009_v38 }
 0x101   : > { %v626_v44 = vmul.f32 %v625_v39, %v622_v41 }
 0x10c   : > { %v618_v34 = vpop.f32.mrf.mxu0 }
 0x10d   : > { %v619_v35 = vadd.f32 %v618_v34, %v549_v33 }
 0x10e   : > { %v962_v36 = vpop.f32.mrf.mxu0 }
 0x10f   : > { %v628_v37 = vmul.f32 0.70710677, %v619_v35  ;;  %v627_v42 = vmul.f32 0.5, %v619_v35  ;;  %v633_v47 = vmul.f32 %v626_v44, %v619_v35 }
 0x111   : > { %1010 = verf.f32 %v628_v37 }
 0x11e   : > { %v1011_v40 = vpop.eup %1010 }
 0x11f   : > { %v630_v43 = vadd.f32 1.0, %v1011_v40 }
 0x121   : > { %v631_v45 = vmul.f32 %v630_v43, %v627_v42 }
 0x123   : > { %v632_v46 = vmul.f32 %v631_v45, %v409_v30 }
 0x125   : > { %v634_v48 = vadd.f32 %v633_v47, %v632_v46 }
 0x127   : > { %996 = vmatmul.mubr.f32.vlgmr.msra.gmra.mxu1 %v634_v48 }
 0x1e7   : > { %v724_v50 = vpop.f32.mrf.mxu1 }
 0x1e8   : > { %v725_v51 = vadd.f32 %v804_v49, %v724_v50 }
 0x1e9   : > { %v997_v52 = vpop.f32.mrf.mxu1 }
 0x1ea   : > { %728 = vst [vmem:[%s317_s11] sm:$0xff] %v725_v51 }
 0x1eb PF: > { %s18_s27 = sadd.s32 1, %s1018_s27  }
 0x1ec   : > { %p15_p4 = scmp.ge.s32.totalorder %s18_s27, 4  }
 0x1ee   :  { %17 = sbr.rel (!%p15_p4) target bundleno = 1 (0x1), region = 85 }

</bundles_post_ra>
